<compile_context>
chip_gen: v5e
topology: v5e:2x2
jax: 0.10.0
libtpu: 0.0.40
codegen_flags: <defaults>
</compile_context>

<pallas_src>
import functools

import jax
import jax.numpy as jnp
from jax import lax
from jax.experimental import pallas as pl
from jax.experimental.pallas import tpu as pltpu

VMEM_SPEC = pl.BlockSpec(memory_space=pltpu.MemorySpace.VMEM)


def _row_tile(rows, cap=128):
    """Largest row tile <= cap that is a multiple of 8 and divides rows (else full rows)."""
    if rows <= cap or rows % 8 != 0:
        return rows
    for t in range(cap, 0, -8):
        if rows % t == 0:
            return t
    return rows


# ----------------------------------------------------------------------------
# Pallas kernels
# ----------------------------------------------------------------------------
def linear_kernel(x_ref, w_ref, b_ref, o_ref):
    """o = x @ w + b  (w is the bf16 MXU operand, f32 accumulation)."""
    o_ref[...] = (jnp.dot(x_ref[...].astype(w_ref.dtype), w_ref[...],
                          preferred_element_type=jnp.float32) + b_ref[...])


def bilstm_head_kernel(xp_ref, whh_ref, woutf_ref, woutb_ref, bout_ref,
                       w_ref, hseqf_ref, hseqb_ref):
    """All L bidirectional LSTMs + the shared linear head, fused into one kernel.

    xp_ref    : (S, B, G) f32   precomputed input projection + bias for every gate /
                                direction / layer.  Gate-major columns [i|f|g|o]; within
                                each gate block the channel order is
                                [fwd_0..fwd_{L-1}, bwd_0..bwd_{L-1}] * H.  The backward
                                half is already time-reversed so a single loop index
                                drives both direction chains.
    whh_ref   : (DH, G) bf16    block-diagonal recurrent weights (DH = 2*L*H, G = 4*DH).
    woutf_ref : (LH, Ln) bf16   fused Linear(2H->n) block for the L forward hiddens.
    woutb_ref : (LH, Ln) bf16   ... and the L backward hiddens (Ln = L*n).
    bout_ref  : (1, Ln) f32
    w_ref     : (T, B, Ln) f32  per-step relation logits (T = S-1).
    hseq*_ref : (S, B, LH) f32  VMEM scratch: time-aligned hidden sequences.
    """
    S, B, G = xp_ref.shape
    DH = G // 4
    LH = DH // 2
    T = S - 1

    whh = whh_ref[...]
    h0 = jnp.zeros((B, DH), jnp.float32)
    c0 = jnp.zeros((B, DH), jnp.float32)

    def step(t, carry):
        h, c = carry
        xg = xp_ref[t]                                            # (B, G)
        # single wide MXU matmul per step: all directions and all L layers at once
        gates = xg + jnp.dot(h.astype(whh.dtype), whh,
                             preferred_element_type=jnp.float32)
        i = jax.nn.sigmoid(gates[:, 0:DH])                        # PyTorch order i,f,g,o
        f = jax.nn.sigmoid(gates[:, DH:2 * DH])
        g = jnp.tanh(gates[:, 2 * DH:3 * DH])
        o = jax.nn.sigmoid(gates[:, 3 * DH:4 * DH])
        c_new = f * c + i * g
        h_new = o * jnp.tanh(c_new)
        hseqf_ref[t] = h_new[:, :LH]                              # fwd hidden at time t
        hseqb_ref[S - 1 - t] = h_new[:, LH:]                      # bwd hidden at time S-1-t
        return h_new, c_new

    lax.fori_loop(0, S, step, (h0, c0))

    # fused linear head over the first T steps (rnn_outputs[:, :-1, :] in the reference)
    ff = hseqf_ref[0:T, :, :].reshape(T * B, LH)
    fb = hseqb_ref[0:T, :, :].reshape(T * B, LH)
    out = (jnp.dot(ff.astype(woutf_ref.dtype), woutf_ref[...],
                   preferred_element_type=jnp.float32)
           + jnp.dot(fb.astype(woutb_ref.dtype), woutb_ref[...],
                     preferred_element_type=jnp.float32)
           + bout_ref[...])
    w_ref[...] = out.reshape(T, B, out.shape[-1])


def drum_state_kernel(x0_ref, w_ref, madj_ref, s_ref, *, r2):
    """DRUM-style state recurrence over the relation graph.

    x0_ref   : (R, E) f32      initial one-hot entity states (rows = b*L + l)
    w_ref    : (T, R, n) f32   softmax-normalized operator weights per step
    madj_ref : (E, r2*E) bf16  all relation operators packed column-wise:
                               cols [r*E:(r+1)*E] = head->tail adjacency of relation r
                               (r < r_size) or tail->head of relation r - r_size.
    s_ref    : (R, E) f32      final normalized state after T steps.
    """
    T = w_ref.shape[0]
    E = x0_ref.shape[-1]
    madj = madj_ref[...]

    def step(t, s):
        wt = w_ref[t]                                             # (R, n)
        # one wide MXU matmul covers every relation/direction for this step
        prod = jnp.dot(s.astype(madj.dtype), madj,
                       preferred_element_type=jnp.float32)        # (R, r2*E)
        acc = wt[:, r2:r2 + 1] * s                                # identity ("self") slot
        # short fixed inner loop (2*r_size operators): VPU weighted reduce, unrolled
        for r in range(r2):
            acc = acc + wt[:, r:r + 1] * prod[:, r * E:(r + 1) * E]
        ssum = jnp.sum(acc, axis=-1, keepdims=True)
        # matches `s / s_sum.clamp(1e-07)`; divide moved to the EUP slot
        # TODO(synk): dropout only applies when is_training=True; omitted here.
        return acc * pl.reciprocal(jnp.maximum(ssum, 1e-7), approx=True)

    s_ref[...] = lax.fori_loop(0, T, step, x0_ref[...])


# ----------------------------------------------------------------------------
# Wrapper (glue)
# ----------------------------------------------------------------------------
def drum_forward(params, input_x, input_r, mh, mt, *, n, T, L, E, emb_size):
    B = input_x.shape[0]
    H = emb_size
    r_size = (n - 1) // 2
    S = T + 1
    LH = L * H
    DH = 2 * LH
    G = 4 * DH
    Ln = L * n
    vmem_bytes = 48 * 1024 * 1024                                 # < 64 MiB v7x VMEM

    # --- embedding / sequence construction (glue) ---
    emb = params["emb"]
    input_emb = jnp.tile(emb[input_r][:, None, :], (1, S, 1))     # (B, S, H)
    input_emb = input_emb.at[:, -1, :].set(emb[-1])               # query slot = emb[-1]
    x = jnp.transpose(input_emb, (1, 0, 2))                       # (S, B, H) time-major

    # --- input projection for every gate/direction/layer: one Pallas matmul ---
    xp = pl.pallas_call(
        linear_kernel,
        out_shape=jax.ShapeDtypeStruct((S * B, G), jnp.float32),
        in_specs=[VMEM_SPEC] * 3,
        out_specs=VMEM_SPEC,
    )(x.reshape(S * B, H), params["wih_cat"], params["bias_cat"])
    # time-reverse the backward-direction gate columns once, so the recurrence kernel
    # drives both direction chains from the same loop index.
    xp = xp.reshape(S, B, 4, DH)
    xp = jnp.concatenate([xp[..., :LH], xp[::-1, :, :, LH:]], axis=-1).reshape(S, B, G)

    # --- fused BiLSTM (all L layers, both directions) + linear head (Pallas) ---
    tb = _row_tile(B)
    wlin = pl.pallas_call(
        bilstm_head_kernel,
        grid=(pl.cdiv(B, tb),),
        out_shape=jax.ShapeDtypeStruct((T, B, Ln), jnp.float32),
        in_specs=[
            pl.BlockSpec((S, tb, G), lambda i: (0, i, 0)),
            pl.BlockSpec((DH, G), lambda i: (0, 0)),
            pl.BlockSpec((LH, Ln), lambda i: (0, 0)),
            pl.BlockSpec((LH, Ln), lambda i: (0, 0)),
            pl.BlockSpec((1, Ln), lambda i: (0, 0)),
        ],
        out_specs=pl.BlockSpec((T, tb, Ln), lambda i: (0, i, 0)),
        scratch_shapes=[pltpu.VMEM((S, tb, LH), jnp.float32),
                        pltpu.VMEM((S, tb, LH), jnp.float32)],
        compiler_params=pltpu.CompilerParams(
            dimension_semantics=("parallel",),
            vmem_limit_bytes=vmem_bytes),
    )(xp, params["whh_bd"], params["wout_f"], params["wout_b"], params["bout"])

    # --- operator weights: softmax hoisted out of the sequential recurrence (glue) ---
    ws = jax.nn.softmax(wlin.reshape(T, B, L, n), axis=-1).reshape(T, B * L, n)

    # --- state recurrence over the relation graph (Pallas) ---
    x0 = jax.nn.one_hot(input_x, E, dtype=jnp.float32)            # (B, E)
    x0_bl = jnp.tile(x0[:, None, :], (1, L, 1)).reshape(B * L, E)
    # pack all relation operators (head->tail then tail->head) into one wide bf16 matrix
    madj = (jnp.concatenate([mh, mt], axis=0)                     # (2*r_size, E, E)
            .transpose(1, 0, 2).reshape(E, 2 * r_size * E).astype(jnp.bfloat16))
    # TODO(synk): for large E the dense (E, 2*r_size*E) operator should be column-tiled
    # and pipelined from HBM (emit_pipeline) instead of held whole in VMEM.

    BL = B * L
    tr = _row_tile(BL)
    s_flat = pl.pallas_call(
        functools.partial(drum_state_kernel, r2=2 * r_size),
        grid=(pl.cdiv(BL, tr),),
        out_shape=jax.ShapeDtypeStruct((BL, E), jnp.float32),
        in_specs=[
            pl.BlockSpec((tr, E), lambda i: (i, 0)),
            pl.BlockSpec((T, tr, n), lambda i: (0, i, 0)),
            pl.BlockSpec((E, 2 * r_size * E), lambda i: (0, 0)),
        ],
        out_specs=pl.BlockSpec((tr, E), lambda i: (i, 0)),
        compiler_params=pltpu.CompilerParams(
            dimension_semantics=("parallel",),
            vmem_limit_bytes=vmem_bytes),
    )(x0_bl, ws, madj)

    return s_flat.reshape(B, L, E).sum(axis=1)                    # s.sum(dim=1) -> (B, E)


# ----------------------------------------------------------------------------
# Parameter init (mirrors the nn.Module shapes) + packing into fused kernel layouts
# ----------------------------------------------------------------------------
def init_params(key, *, n, L, emb_size):
    H = emb_size
    DH = 2 * L * H
    G = 4 * DH
    LH = L * H
    keys = jax.random.split(key, 4 + 8 * L)
    ki = iter(keys)

    bound = 1.0 / jnp.sqrt(H)
    # nn.Parameter emb (n, H), kaiming_uniform_(a=sqrt(5)) -> bound = 1/sqrt(H)
    emb = jax.random.uniform(next(ki), (n, H), jnp.float32, -bound, bound)

    # L bidirectional LSTMs, PyTorch shapes per direction: W_ih(4H,H), W_hh(4H,H), b_ih, b_hh.
    # Packed: gate-major columns [i|f|g|o]; within a gate, channel k = dir*L + l (H wide).
    wih_cat = jnp.zeros((H, G), jnp.float32)
    whh_bd = jnp.zeros((DH, G), jnp.float32)     # block-diagonal recurrent weights
    bias_cat = jnp.zeros((1, G), jnp.float32)
    for l in range(L):
        for d in range(2):                                        # 0 = forward, 1 = reverse
            w_ih = jax.random.uniform(next(ki), (4 * H, H), jnp.float32, -bound, bound)
            w_hh = jax.random.uniform(next(ki), (4 * H, H), jnp.float32, -bound, bound)
            b_ih = jax.random.uniform(next(ki), (4 * H,), jnp.float32, -bound, bound)
            b_hh = jax.random.uniform(next(ki), (4 * H,), jnp.float32, -bound, bound)
            wih_t, whh_t = w_ih.T, w_hh.T                         # (H, 4H)
            b = (b_ih + b_hh).reshape(1, 4 * H)
            k = d * L + l                                         # channel index
            for g in range(4):                                    # PyTorch order i,f,g,o
                cols = slice(g * DH + k * H, g * DH + (k + 1) * H)
                src = slice(g * H, (g + 1) * H)
                wih_cat = wih_cat.at[:, cols].set(wih_t[:, src])
                whh_bd = whh_bd.at[k * H:(k + 1) * H, cols].set(whh_t[:, src])
                bias_cat = bias_cat.at[:, cols].set(b[:, src])

    # shared Linear(2H -> n), fused across the L heads (block-diagonal over l)
    bound_lin = 1.0 / jnp.sqrt(2 * H)
    lin_w = jax.random.uniform(next(ki), (n, 2 * H), jnp.float32, -bound_lin, bound_lin)
    lin_b = jax.random.uniform(next(ki), (n,), jnp.float32, -bound_lin, bound_lin)
    lin_w_t = lin_w.T                                             # (2H, n)
    wout_f = jnp.zeros((LH, L * n), jnp.float32)
    wout_b = jnp.zeros((LH, L * n), jnp.float32)
    for l in range(L):
        wout_f = wout_f.at[l * H:(l + 1) * H, l * n:(l + 1) * n].set(lin_w_t[:H, :])
        wout_b = wout_b.at[l * H:(l + 1) * H, l * n:(l + 1) * n].set(lin_w_t[H:, :])
    bout = jnp.tile(lin_b.reshape(1, n), (1, L))

    return {
        "emb": emb,
        "wih_cat": wih_cat.astype(jnp.bfloat16),   # bf16 MXU operands, f32 accumulation
        "bias_cat": bias_cat,
        "whh_bd": whh_bd.astype(jnp.bfloat16),
        "wout_f": wout_f.astype(jnp.bfloat16),
        "wout_b": wout_b.astype(jnp.bfloat16),
        "bout": bout,
    }


# ----------------------------------------------------------------------------
# Demo
# ----------------------------------------------------------------------------
if __name__ == "__main__":
    # small, module-consistent shapes
    n, T, L, E, N, emb_size = 5, 3, 2, 8, 12, 16
    B = 2
    r_size = (n - 1) // 2

    key = jax.random.PRNGKey(0)
    k_param, k_x, k_r, k_h, k_rel, k_t = jax.random.split(key, 6)

    params = init_params(k_param, n=n, L=L, emb_size=emb_size)

    input_x = jax.random.randint(k_x, (B,), 0, E).astype(jnp.int32)        # entity ids
    input_r = jax.random.randint(k_r, (B,), 0, n).astype(jnp.int32)        # relation ids

    # Synthetic deterministic knowledge-graph triples -> dense per-relation adjacency.
    # (Stands in for e2triple / triple2e / r2triple used by the undefined sparse helpers.)
    heads = jax.random.randint(k_h, (N,), 0, E)
    rels = jax.random.randint(k_rel, (N,), 0, r_size)
    tails = jax.random.randint(k_t, (N,), 0, E)
    mh = jnp.zeros((r_size, E, E), jnp.float32).at[rels, heads, tails].set(1.0)
    mt = jnp.transpose(mh, (0, 2, 1))                                      # inverse relations

    fwd = jax.jit(functools.partial(drum_forward, n=n, T=T, L=L, E=E, emb_size=emb_size))
    out = jax.block_until_ready(fwd(params, input_x, input_r, mh, mt))

    assert out.shape == (B, E), out.shape
    assert bool(jnp.all(jnp.isfinite(out)))
    print("KERNEL_OK")
</pallas_src>

<mosaic_0001>
module attributes {stable_mosaic.version = 11 : i64} {
  func.func @bilstm_head_kernel(%arg0: i32, %arg1: memref<4x2x256xf32, #tpu.memory_space<vmem>>, %arg2: memref<64x256xbf16, #tpu.memory_space<vmem>>, %arg3: memref<32x10xbf16, #tpu.memory_space<vmem>>, %arg4: memref<32x10xbf16, #tpu.memory_space<vmem>>, %arg5: memref<1x10xf32, #tpu.memory_space<vmem>>, %arg6: memref<3x2x10xf32, #tpu.memory_space<vmem>>, %arg7: memref<4x2x32xf32, #tpu.memory_space<vmem>>, %arg8: memref<4x2x32xf32, #tpu.memory_space<vmem>>) attributes {dimension_semantics = [#tpu.dimension_semantics<parallel>], iteration_bounds = array<i64: 1>, scalar_prefetch = 0 : i64, scratch_operands = 2 : i64, tpu.core_type = #tpu.core_type<tc>, window_params = [{transform_indices = @transform_0, window_bounds = array<i64: 4, 2, 256>}, {pipeline_mode = #tpu.pipeline_mode<synchronous>, transform_indices = @transform_1, window_bounds = array<i64: 64, 256>}, {pipeline_mode = #tpu.pipeline_mode<synchronous>, transform_indices = @transform_2, window_bounds = array<i64: 32, 10>}, {pipeline_mode = #tpu.pipeline_mode<synchronous>, transform_indices = @transform_3, window_bounds = array<i64: 32, 10>}, {pipeline_mode = #tpu.pipeline_mode<synchronous>, transform_indices = @transform_4, window_bounds = array<i64: 1, 10>}, {transform_indices = @transform_5, window_bounds = array<i64: 3, 2, 10>}]} {
    %c0 = arith.constant 0 : index
    %c0_0 = arith.constant 0 : index
    %0 = vector.load %arg2[%c0, %c0_0] : memref<64x256xbf16, #tpu.memory_space<vmem>>, vector<64x256xbf16>
    %cst = arith.constant 0.000000e+00 : f32
    %1 = vector.broadcast %cst : f32 to vector<2x64xf32>
    %cst_1 = arith.constant 0.000000e+00 : f32
    %2 = vector.broadcast %cst_1 : f32 to vector<2x64xf32>
    %c0_i32 = arith.constant 0 : i32
    %c4_i32 = arith.constant 4 : i32
    %3 = arith.addi %c0_i32, %c4_i32 : i32
    %c1_i32 = arith.constant 1 : i32
    %4:2 = scf.for %arg9 = %c0_i32 to %3 step %c1_i32 iter_args(%arg10 = %1, %arg11 = %2) -> (vector<2x64xf32>, vector<2x64xf32>)  : i32 {
      %21 = arith.index_cast %arg9 : i32 to index
      %c0_20 = arith.constant 0 : index
      %c0_21 = arith.constant 0 : index
      %22 = vector.load %arg1[%21, %c0_20, %c0_21] : memref<4x2x256xf32, #tpu.memory_space<vmem>>, vector<1x2x256xf32>
      %23 = vector.shape_cast %22 : vector<1x2x256xf32> to vector<2x256xf32>
      %24 = arith.truncf %arg10 : vector<2x64xf32> to vector<2x64xbf16>
      %cst_22 = arith.constant dense<0.000000e+00> : vector<2x256xf32>
      %25 = tpu.matmul %24, %0, %cst_22 {dimension_numbers = #tpu.dot_dimension_numbers<[1], [0], [0], [1], [0, 0, 1, 1], [], []>} : vector<2x64xbf16>, vector<64x256xbf16>, vector<2x256xf32> -> vector<2x256xf32>
      %26 = arith.addf %23, %25 : vector<2x256xf32>
      %27 = vector.extract_strided_slice %26 {offsets = [0, 0], sizes = [2, 64], strides = [1, 1]} : vector<2x256xf32> to vector<2x64xf32>
      %28 = arith.negf %27 : vector<2x64xf32>
      %29 = math.exp %28 : vector<2x64xf32>
      %cst_23 = arith.constant 1.000000e+00 : f32
      %30 = vector.broadcast %cst_23 : f32 to vector<2x64xf32>
      %31 = arith.addf %30, %29 : vector<2x64xf32>
      %32 = arith.divf %30, %31 : vector<2x64xf32>
      %33 = vector.extract_strided_slice %26 {offsets = [0, 64], sizes = [2, 64], strides = [1, 1]} : vector<2x256xf32> to vector<2x64xf32>
      %34 = arith.negf %33 : vector<2x64xf32>
      %35 = math.exp %34 : vector<2x64xf32>
      %cst_24 = arith.constant 1.000000e+00 : f32
      %36 = vector.broadcast %cst_24 : f32 to vector<2x64xf32>
      %37 = arith.addf %36, %35 : vector<2x64xf32>
      %38 = arith.divf %36, %37 : vector<2x64xf32>
      %39 = vector.extract_strided_slice %26 {offsets = [0, 128], sizes = [2, 64], strides = [1, 1]} : vector<2x256xf32> to vector<2x64xf32>
      %40 = math.tanh %39 : vector<2x64xf32>
      %41 = vector.extract_strided_slice %26 {offsets = [0, 192], sizes = [2, 64], strides = [1, 1]} : vector<2x256xf32> to vector<2x64xf32>
      %42 = arith.negf %41 : vector<2x64xf32>
      %43 = math.exp %42 : vector<2x64xf32>
      %cst_25 = arith.constant 1.000000e+00 : f32
      %44 = vector.broadcast %cst_25 : f32 to vector<2x64xf32>
      %45 = arith.addf %44, %43 : vector<2x64xf32>
      %46 = arith.divf %44, %45 : vector<2x64xf32>
      %47 = arith.mulf %38, %arg11 : vector<2x64xf32>
      %48 = arith.mulf %32, %40 : vector<2x64xf32>
      %49 = arith.addf %47, %48 : vector<2x64xf32>
      %50 = math.tanh %49 : vector<2x64xf32>
      %51 = arith.mulf %46, %50 : vector<2x64xf32>
      %52 = vector.extract_strided_slice %51 {offsets = [0, 0], sizes = [2, 32], strides = [1, 1]} : vector<2x64xf32> to vector<2x32xf32>
      %53 = arith.index_cast %arg9 : i32 to index
      %c0_26 = arith.constant 0 : index
      %c0_27 = arith.constant 0 : index
      %54 = vector.load %arg7[%53, %c0_26, %c0_27] : memref<4x2x32xf32, #tpu.memory_space<vmem>>, vector<1x2x32xf32>
      %55 = vector.shape_cast %54 : vector<1x2x32xf32> to vector<2x32xf32>
      %56 = vector.shape_cast %52 : vector<2x32xf32> to vector<1x2x32xf32>
      tpu.vector_store %arg7[%53, %c0_26, %c0_27], %56 {strides = array<i32>} : memref<4x2x32xf32, #tpu.memory_space<vmem>>, vector<1x2x32xf32>,
      %57 = vector.extract_strided_slice %51 {offsets = [0, 32], sizes = [2, 32], strides = [1, 1]} : vector<2x64xf32> to vector<2x32xf32>
      %c3_i32 = arith.constant 3 : i32
      %58 = arith.subi %c3_i32, %arg9 : i32
      %59 = arith.index_cast %58 : i32 to index
      %c0_28 = arith.constant 0 : index
      %c0_29 = arith.constant 0 : index
      %60 = vector.load %arg8[%59, %c0_28, %c0_29] : memref<4x2x32xf32, #tpu.memory_space<vmem>>, vector<1x2x32xf32>
      %61 = vector.shape_cast %60 : vector<1x2x32xf32> to vector<2x32xf32>
      %62 = vector.shape_cast %57 : vector<2x32xf32> to vector<1x2x32xf32>
      tpu.vector_store %arg8[%59, %c0_28, %c0_29], %62 {strides = array<i32>} : memref<4x2x32xf32, #tpu.memory_space<vmem>>, vector<1x2x32xf32>,
      scf.yield %51, %49 : vector<2x64xf32>, vector<2x64xf32>
    }
    %c4_i32_2 = arith.constant 4 : i32
    %c0_3 = arith.constant 0 : index
    %c0_4 = arith.constant 0 : index
    %c0_5 = arith.constant 0 : index
    %5 = vector.load %arg7[%c0_3, %c0_4, %c0_5] : memref<4x2x32xf32, #tpu.memory_space<vmem>>, vector<3x2x32xf32>
    %6 = vector.shape_cast %5 : vector<3x2x32xf32> to vector<6x32xf32>
    %c0_6 = arith.constant 0 : index
    %c0_7 = arith.constant 0 : index
    %c0_8 = arith.constant 0 : index
    %7 = vector.load %arg8[%c0_6, %c0_7, %c0_8] : memref<4x2x32xf32, #tpu.memory_space<vmem>>, vector<3x2x32xf32>
    %8 = vector.shape_cast %7 : vector<3x2x32xf32> to vector<6x32xf32>
    %9 = arith.truncf %6 : vector<6x32xf32> to vector<6x32xbf16>
    %c0_9 = arith.constant 0 : index
    %c0_10 = arith.constant 0 : index
    %10 = vector.load %arg3[%c0_9, %c0_10] : memref<32x10xbf16, #tpu.memory_space<vmem>>, vector<32x10xbf16>
    %cst_11 = arith.constant dense<0.000000e+00> : vector<6x10xf32>
    %11 = tpu.matmul %9, %10, %cst_11 {dimension_numbers = #tpu.dot_dimension_numbers<[1], [0], [0], [1], [0, 0, 1, 1], [], []>} : vector<6x32xbf16>, vector<32x10xbf16>, vector<6x10xf32> -> vector<6x10xf32>
    %12 = arith.truncf %8 : vector<6x32xf32> to vector<6x32xbf16>
    %c0_12 = arith.constant 0 : index
    %c0_13 = arith.constant 0 : index
    %13 = vector.load %arg4[%c0_12, %c0_13] : memref<32x10xbf16, #tpu.memory_space<vmem>>, vector<32x10xbf16>
    %cst_14 = arith.constant dense<0.000000e+00> : vector<6x10xf32>
    %14 = tpu.matmul %12, %13, %cst_14 {dimension_numbers = #tpu.dot_dimension_numbers<[1], [0], [0], [1], [0, 0, 1, 1], [], []>} : vector<6x32xbf16>, vector<32x10xbf16>, vector<6x10xf32> -> vector<6x10xf32>
    %15 = arith.addf %11, %14 : vector<6x10xf32>
    %c0_15 = arith.constant 0 : index
    %c0_16 = arith.constant 0 : index
    %16 = vector.load %arg5[%c0_15, %c0_16] : memref<1x10xf32, #tpu.memory_space<vmem>>, vector<1x10xf32>
    %17 = vector.broadcast %16 : vector<1x10xf32> to vector<6x10xf32>
    %18 = arith.addf %15, %17 : vector<6x10xf32>
    %19 = vector.shape_cast %18 : vector<6x10xf32> to vector<3x2x10xf32>
    %c0_17 = arith.constant 0 : index
    %c0_18 = arith.constant 0 : index
    %c0_19 = arith.constant 0 : index
    %20 = vector.load %arg6[%c0_17, %c0_18, %c0_19] : memref<3x2x10xf32, #tpu.memory_space<vmem>>, vector<3x2x10xf32>
    tpu.vector_store %arg6[%c0_17, %c0_18, %c0_19], %19 {strides = array<i32>} : memref<3x2x10xf32, #tpu.memory_space<vmem>>, vector<3x2x10xf32>,
    return
  }
  func.func @transform_0(%arg0: i32) -> (i32, i32, i32) {
    %c0_i32 = arith.constant 0 : i32
    %c0_i32_0 = arith.constant 0 : i32
    %c0_i32_1 = arith.constant 0 : i32
    return %c0_i32, %arg0, %c0_i32_0 : i32, i32, i32
  }
  func.func @transform_1(%arg0: i32) -> (i32, i32) {
    %c0_i32 = arith.constant 0 : i32
    %c0_i32_0 = arith.constant 0 : i32
    %c0_i32_1 = arith.constant 0 : i32
    return %c0_i32, %c0_i32_0 : i32, i32
  }
  func.func @transform_2(%arg0: i32) -> (i32, i32) {
    %c0_i32 = arith.constant 0 : i32
    %c0_i32_0 = arith.constant 0 : i32
    %c0_i32_1 = arith.constant 0 : i32
    return %c0_i32, %c0_i32_0 : i32, i32
  }
  func.func @transform_3(%arg0: i32) -> (i32, i32) {
    %c0_i32 = arith.constant 0 : i32
    %c0_i32_0 = arith.constant 0 : i32
    %c0_i32_1 = arith.constant 0 : i32
    return %c0_i32, %c0_i32_0 : i32, i32
  }
  func.func @transform_4(%arg0: i32) -> (i32, i32) {
    %c0_i32 = arith.constant 0 : i32
    %c0_i32_0 = arith.constant 0 : i32
    %c0_i32_1 = arith.constant 0 : i32
    return %c0_i32, %c0_i32_0 : i32, i32
  }
  func.func @transform_5(%arg0: i32) -> (i32, i32, i32) {
    %c0_i32 = arith.constant 0 : i32
    %c0_i32_0 = arith.constant 0 : i32
    %c0_i32_1 = arith.constant 0 : i32
    return %c0_i32, %arg0, %c0_i32_0 : i32, i32, i32
  }
}

module attributes {stable_mosaic.version = 11 : i64} {
  func.func @linear_kernel(%arg0: memref<8x16xf32, #tpu.memory_space<vmem>>, %arg1: memref<16x256xbf16, #tpu.memory_space<vmem>>, %arg2: memref<1x256xf32, #tpu.memory_space<vmem>>, %arg3: memref<8x256xf32, #tpu.memory_space<vmem>>) attributes {dimension_semantics = [], scalar_prefetch = 0 : i64, scratch_operands = 0 : i64, tpu.core_type = #tpu.core_type<tc>} {
    %c0 = arith.constant 0 : index
    %c0_0 = arith.constant 0 : index
    %0 = vector.load %arg0[%c0, %c0_0] : memref<8x16xf32, #tpu.memory_space<vmem>>, vector<8x16xf32>
    %1 = arith.truncf %0 : vector<8x16xf32> to vector<8x16xbf16>
    %c0_1 = arith.constant 0 : index
    %c0_2 = arith.constant 0 : index
    %2 = vector.load %arg1[%c0_1, %c0_2] : memref<16x256xbf16, #tpu.memory_space<vmem>>, vector<16x256xbf16>
    %cst = arith.constant dense<0.000000e+00> : vector<8x256xf32>
    %3 = tpu.matmul %1, %2, %cst {dimension_numbers = #tpu.dot_dimension_numbers<[1], [0], [0], [1], [0, 0, 1, 1], [], []>} : vector<8x16xbf16>, vector<16x256xbf16>, vector<8x256xf32> -> vector<8x256xf32>
    %c0_3 = arith.constant 0 : index
    %c0_4 = arith.constant 0 : index
    %4 = vector.load %arg2[%c0_3, %c0_4] : memref<1x256xf32, #tpu.memory_space<vmem>>, vector<1x256xf32>
    %5 = vector.broadcast %4 : vector<1x256xf32> to vector<8x256xf32>
    %6 = arith.addf %3, %5 : vector<8x256xf32>
    %c0_5 = arith.constant 0 : index
    %c0_6 = arith.constant 0 : index
    %7 = vector.load %arg3[%c0_5, %c0_6] : memref<8x256xf32, #tpu.memory_space<vmem>>, vector<8x256xf32>
    tpu.vector_store %arg3[%c0_5, %c0_6], %6 {strides = array<i32>} : memref<8x256xf32, #tpu.memory_space<vmem>>, vector<8x256xf32>,
    return
  }
}

module attributes {stable_mosaic.version = 11 : i64} {
  func.func @drum_state_kernel(%arg0: i32, %arg1: memref<4x8xf32, #tpu.memory_space<vmem>>, %arg2: memref<3x4x5xf32, #tpu.memory_space<vmem>>, %arg3: memref<8x32xbf16, #tpu.memory_space<vmem>>, %arg4: memref<4x8xf32, #tpu.memory_space<vmem>>) attributes {dimension_semantics = [#tpu.dimension_semantics<parallel>], iteration_bounds = array<i64: 1>, scalar_prefetch = 0 : i64, scratch_operands = 0 : i64, tpu.core_type = #tpu.core_type<tc>, window_params = [{transform_indices = @transform_0, window_bounds = array<i64: 4, 8>}, {transform_indices = @transform_1, window_bounds = array<i64: 3, 4, 5>}, {pipeline_mode = #tpu.pipeline_mode<synchronous>, transform_indices = @transform_2, window_bounds = array<i64: 8, 32>}, {transform_indices = @transform_3, window_bounds = array<i64: 4, 8>}]} {
    %c0 = arith.constant 0 : index
    %c0_0 = arith.constant 0 : index
    %0 = vector.load %arg3[%c0, %c0_0] : memref<8x32xbf16, #tpu.memory_space<vmem>>, vector<8x32xbf16>
    %c0_1 = arith.constant 0 : index
    %c0_2 = arith.constant 0 : index
    %1 = vector.load %arg1[%c0_1, %c0_2] : memref<4x8xf32, #tpu.memory_space<vmem>>, vector<4x8xf32>
    %c0_i32 = arith.constant 0 : i32
    %c3_i32 = arith.constant 3 : i32
    %2 = arith.addi %c0_i32, %c3_i32 : i32
    %c1_i32 = arith.constant 1 : i32
    %3 = scf.for %arg5 = %c0_i32 to %2 step %c1_i32 iter_args(%arg6 = %1) -> (vector<4x8xf32>)  : i32 {
      %5 = arith.index_cast %arg5 : i32 to index
      %c0_6 = arith.constant 0 : index
      %c0_7 = arith.constant 0 : index
      %6 = vector.load %arg2[%5, %c0_6, %c0_7] : memref<3x4x5xf32, #tpu.memory_space<vmem>>, vector<1x4x5xf32>
      %7 = vector.shape_cast %6 : vector<1x4x5xf32> to vector<4x5xf32>
      %8 = arith.truncf %arg6 : vector<4x8xf32> to vector<4x8xbf16>
      %cst = arith.constant dense<0.000000e+00> : vector<4x32xf32>
      %9 = tpu.matmul %8, %0, %cst {dimension_numbers = #tpu.dot_dimension_numbers<[1], [0], [0], [1], [0, 0, 1, 1], [], []>} : vector<4x8xbf16>, vector<8x32xbf16>, vector<4x32xf32> -> vector<4x32xf32>
      %10 = vector.extract_strided_slice %7 {offsets = [0, 4], sizes = [4, 1], strides = [1, 1]} : vector<4x5xf32> to vector<4x1xf32>
      %11 = vector.broadcast %10 : vector<4x1xf32> to vector<4x8xf32>
      %12 = arith.mulf %11, %arg6 : vector<4x8xf32>
      %13 = vector.extract_strided_slice %7 {offsets = [0, 0], sizes = [4, 1], strides = [1, 1]} : vector<4x5xf32> to vector<4x1xf32>
      %14 = vector.extract_strided_slice %9 {offsets = [0, 0], sizes = [4, 8], strides = [1, 1]} : vector<4x32xf32> to vector<4x8xf32>
      %15 = vector.broadcast %13 : vector<4x1xf32> to vector<4x8xf32>
      %16 = arith.mulf %15, %14 : vector<4x8xf32>
      %17 = arith.addf %12, %16 : vector<4x8xf32>
      %18 = vector.extract_strided_slice %7 {offsets = [0, 1], sizes = [4, 1], strides = [1, 1]} : vector<4x5xf32> to vector<4x1xf32>
      %19 = vector.extract_strided_slice %9 {offsets = [0, 8], sizes = [4, 8], strides = [1, 1]} : vector<4x32xf32> to vector<4x8xf32>
      %20 = vector.broadcast %18 : vector<4x1xf32> to vector<4x8xf32>
      %21 = arith.mulf %20, %19 : vector<4x8xf32>
      %22 = arith.addf %17, %21 : vector<4x8xf32>
      %23 = vector.extract_strided_slice %7 {offsets = [0, 2], sizes = [4, 1], strides = [1, 1]} : vector<4x5xf32> to vector<4x1xf32>
      %24 = vector.extract_strided_slice %9 {offsets = [0, 16], sizes = [4, 8], strides = [1, 1]} : vector<4x32xf32> to vector<4x8xf32>
      %25 = vector.broadcast %23 : vector<4x1xf32> to vector<4x8xf32>
      %26 = arith.mulf %25, %24 : vector<4x8xf32>
      %27 = arith.addf %22, %26 : vector<4x8xf32>
      %28 = vector.extract_strided_slice %7 {offsets = [0, 3], sizes = [4, 1], strides = [1, 1]} : vector<4x5xf32> to vector<4x1xf32>
      %29 = vector.extract_strided_slice %9 {offsets = [0, 24], sizes = [4, 8], strides = [1, 1]} : vector<4x32xf32> to vector<4x8xf32>
      %30 = vector.broadcast %28 : vector<4x1xf32> to vector<4x8xf32>
      %31 = arith.mulf %30, %29 : vector<4x8xf32>
      %32 = arith.addf %27, %31 : vector<4x8xf32>
      %cst_8 = arith.constant dense<0.000000e+00> : vector<4xf32>
      %33 = vector.multi_reduction <add>, %32, %cst_8 [1] : vector<4x8xf32> to vector<4xf32>
      %34 = vector.shape_cast %33 : vector<4xf32> to vector<4x1xf32>
      %cst_9 = arith.constant 1.000000e-07 : f32
      %35 = vector.broadcast %cst_9 : f32 to vector<4x1xf32>
      %36 = arith.maximumf %34, %35 : vector<4x1xf32>
      %37 = tpu.reciprocal %36 {approx = true} : vector<4x1xf32> -> vector<4x1xf32>
      %38 = vector.broadcast %37 : vector<4x1xf32> to vector<4x8xf32>
      %39 = arith.mulf %32, %38 : vector<4x8xf32>
      scf.yield %39 : vector<4x8xf32>
    }
    %c3_i32_3 = arith.constant 3 : i32
    %c0_4 = arith.constant 0 : index
    %c0_5 = arith.constant 0 : index
    %4 = vector.load %arg4[%c0_4, %c0_5] : memref<4x8xf32, #tpu.memory_space<vmem>>, vector<4x8xf32>
    tpu.vector_store %arg4[%c0_4, %c0_5], %3 {strides = array<i32>} : memref<4x8xf32, #tpu.memory_space<vmem>>, vector<4x8xf32>,
    return
  }
  func.func @transform_0(%arg0: i32) -> (i32, i32) {
    %c0_i32 = arith.constant 0 : i32
    %c0_i32_0 = arith.constant 0 : i32
    return %arg0, %c0_i32 : i32, i32
  }
  func.func @transform_1(%arg0: i32) -> (i32, i32, i32) {
    %c0_i32 = arith.constant 0 : i32
    %c0_i32_0 = arith.constant 0 : i32
    %c0_i32_1 = arith.constant 0 : i32
    return %c0_i32, %arg0, %c0_i32_0 : i32, i32, i32
  }
  func.func @transform_2(%arg0: i32) -> (i32, i32) {
    %c0_i32 = arith.constant 0 : i32
    %c0_i32_0 = arith.constant 0 : i32
    %c0_i32_1 = arith.constant 0 : i32
    return %c0_i32, %c0_i32_0 : i32, i32
  }
  func.func @transform_3(%arg0: i32) -> (i32, i32) {
    %c0_i32 = arith.constant 0 : i32
    %c0_i32_0 = arith.constant 0 : i32
    return %arg0, %c0_i32 : i32, i32
  }
}

</mosaic_0001>

<bundles_post_ra>
// kernel: drum_forward.3
= control target key start
LH: loop header
LB: loop body
LE: loop exit
PB: predicated region body
PF: predicated region fallthrough
CT: control target
= control target key end

     0   :  { %vm35_vm0 = vcmask 130048   ;;  %s127_s1 = inlined_call_operand.vmem [shape: bf16[16,256], index: 1, kind: input, shape index: {}]   ;;  %s128_s0 = inlined_call_operand.vmem [shape: f32[8,16], index: 0, kind: input, shape index: {}]   ;;  %s129_s2 = inlined_call_operand.vmem [shape: f32[1,256], index: 2, kind: input, shape index: {}]   ;;  %s130_s3 = inlined_call_operand.vmem [shape: f32[8,256], index: 3, kind: output, shape index: {}]  }
   0x1   :  { %v73_v0 = vld [vmem:[%s127_s1] sm:$0xf]  ;;  %v82_v1 = vld [vmem:[%s127_s1 + $0x4] sm:$0xf0]  ;;  %v81_v2 = vld [vmem:[%s127_s1 + $0x4] sm:$0xf] }
   0x2   :  { %v74_v3 = vor.u32 %v82_v1, %v73_v0  ;;  %v75_v4 = vld [vmem:[%s127_s1 + $0x8] sm:$0xf0]  ;;  %v15_v5 = vld [vmem:[%s128_s0] sm:$0xff] }
   0x3   :  { %v78_v6 = vor.u32 %v81_v2, %v75_v4  ;;  %v16_v7 = vpack.c.bf16 %v15_v5, %v15_v5  ;;  %v19_v8 = vld [vmem:[%s129_s2] sm:$0x3] }
   0x4   :  { %46 = vmatpush.bf16.msra.mxu0 %v74_v3  ;;  %v21_v9 = vperm.slane %v19_v8, 0  ;;  %v22_v10 = vperm.slane %v19_v8, 1 }
   0x5   :  { %59 = vmatpush.bf16.msra.mxu1 %v78_v6 }
   0x7   :  { %79 = vmatmul.msk.bf16.vlgmr.msra.gmra.mxu0 %vm35_vm0, %v16_v7 }
   0x8   :  { %80 = vmatmul.msk.bf16.vlgmr.msra.gmra.mxu1 %vm35_vm0, %v16_v7 }
  0x84   :  { %v48_v11 = vpop.f32.mrf.mxu0 }
  0x85   :  { %v49_v12 = vadd.f32 %v48_v11, %v21_v9  ;;  %v61_v13 = vpop.f32.mrf.mxu1 }
  0x86   :  { %v62_v14 = vadd.f32 %v61_v13, %v22_v10 }
  0x87   :  { %65 = vst [vmem:[%s130_s3] sm:$0xff] %v49_v12 }
  0x88   :  { %66 = vst [vmem:[%s130_s3 + $0x8] sm:$0xff] %v62_v14 }
  0x8c   :  { %v50_v15 = vpop.f32.mrf.mxu0 }
  0x8d   :  { %v63_v16 = vpop.f32.mrf.mxu1 }

// kernel: drum_forward.4
= control target key start
LH: loop header
LB: loop body
LE: loop exit
PB: predicated region body
PF: predicated region fallthrough
CT: control target
= control target key end

     0   :  { %v564_v16 = vmov 0.0   ;;  %v566_v17 = vmov 0.0   ;;  %s568_s25 = smov 0   ;;  %s628_s0 = inlined_call_operand.vmem [shape: f32[4,2,256], index: 0, kind: input, shape index: {}]   ;;  %s629_s1 = inlined_call_operand.vmem [shape: bf16[64,256], index: 1, kind: input, shape index: {}]   ;;  %s630_s2 = inlined_call_operand.vmem [shape: bf16[32,10], index: 2, kind: input, shape index: {}]   ;;  %s631_s3 = inlined_call_operand.vmem [shape: bf16[32,10], index: 3, kind: input, shape index: {}]   ;;  %s632_s4 = inlined_call_operand.vmem [shape: f32[1,10], index: 4, kind: input, shape index: {}]   ;;  %s633_s5 = inlined_call_operand.vmem [shape: f32[3,2,10], index: 5, kind: output, shape index: {}]  }
   0x1   :  { %v487_v0 = vld [vmem:[%s629_s1 + $0x4] sm:$0xf]  ;;  %v492_v1 = vld [vmem:[%s629_s1] sm:$0xf]  ;;  %v497_v2 = vld [vmem:[%s629_s1 + $0x8] sm:$0xf0] }
   0x2   :  { %v502_v3 = vld [vmem:[%s629_s1 + $0x4] sm:$0xf0]  ;;  %v507_v4 = vld [vmem:[%s629_s1 + $0x14] sm:$0xf]  ;;  %v512_v5 = vld [vmem:[%s629_s1 + $0x10] sm:$0xf] }
   0x3   :  { %v517_v6 = vld [vmem:[%s629_s1 + $0x18] sm:$0xf0]  ;;  %v522_v7 = vld [vmem:[%s629_s1 + $0x14] sm:$0xf0]  ;;  %v527_v8 = vld [vmem:[%s629_s1 + $0x24] sm:$0xf] }
   0x4   :  { %v532_v9 = vld [vmem:[%s629_s1 + $0x20] sm:$0xf]  ;;  %v537_v10 = vld [vmem:[%s629_s1 + $0x28] sm:$0xf0]  ;;  %v542_v11 = vld [vmem:[%s629_s1 + $0x24] sm:$0xf0] }
   0x5   :  { %v547_v12 = vld [vmem:[%s629_s1 + $0x34] sm:$0xf]  ;;  %v552_v13 = vld [vmem:[%s629_s1 + $0x30] sm:$0xf]  ;;  %v557_v14 = vld [vmem:[%s629_s1 + $0x38] sm:$0xf0] }
   0x6   :  { %v562_v15 = vld [vmem:[%s629_s1 + $0x34] sm:$0xf0] }
   0x7 LB: > { %v348_v18 = vor.u32 %v562_v15, %v552_v13  ;;  %v352_v19 = vor.u32 %v547_v12, %v557_v14  ;;  %v340_v20 = vor.u32 %v542_v11, %v532_v9  ;;  %v344_v21 = vor.u32 %v527_v8, %v537_v10  ;;  %s384_s1 = sshll.u32 %s450_s25, 2  ;;  %s452_s29 = smov 64   ;;  %s450_s25 = sphi %s568_s25, %s34_s25   ;;  %v446_v17 = vphi %v566_v17, %v177_v17   ;;  %v442_v16 = vphi %v564_v16, %v171_v16  }
   0x8   : > { %v332_v22 = vor.u32 %v522_v7, %v512_v5  ;;  %v336_v23 = vor.u32 %v507_v4, %v517_v6  ;;  %v324_v24 = vor.u32 %v502_v3, %v492_v1  ;;  %v328_v25 = vor.u32 %v487_v0, %v497_v2  ;;  %s39_s28 = scalar_lea.vmem %s628_s0, %s384_s1  ;;  %s319_s30 = sshll.u32 %s450_s25, 1 }
   0x9   : > { %90 = vmatpush.bf16.msra.mxu0 %v348_v18  ;;  %103 = vmatpush.bf16.msra.mxu1 %v352_v19  ;;  %v41_v26 = vpack.c.bf16 %v446_v17, %v446_v17  ;;  %vm82_vm0 = vcmask 523264   ;;  %vm115_vm1 = vcmask 1041408   ;;  %v40_v29 = vld [vmem:[%s39_s28] sm:$0xf]  ;;  %vm179_vm10 = vcmask 254976   ;;  %s178_s6 = scalar_lea.vmem [#allocation2], %s319_s30 }
   0xa   : > { %s453_s7 = smov 96   ;;  %s181_s8 = ssub.s32 3, %s450_s25 }
   0xb   : > { %s357_s9 = sshll.u32 %s181_s8, 1  ;;  %s34_s25 = sadd.s32 1, %s450_s25  }
   0xc   : > { %s189_s10 = scalar_lea.vmem [#allocation3], %s357_s9  ;;  %p31_p0 = scmp.ge.s32.totalorder %s34_s25, 4  }
   0xd   : > { %91 = vmatpush.bf16.msra.mxu0 %v340_v20  ;;  %104 = vmatpush.bf16.msra.mxu1 %v344_v21  ;;  %v387_v0 = vld [vmem:[%s631_s3] sm:$0xff] (%p31_p0)  ;;  %vm239_vm11 = vcmask (%p31_p0), 261120   ;;  %vm294_vm12 = vcmask (%p31_p0), 74752  }
   0xe   :  { %v427_v10 = vld [vmem:[%s632_s4] ss:$0 sm:$0xff] (%p31_p0) }
  0x11   : > { %92 = vmatpush.bf16.msra.mxu0 %v332_v22  ;;  %105 = vmatpush.bf16.msra.mxu1 %v336_v23 }
  0x15   : > { %93 = vmatpush.bf16.msra.mxu0 %v324_v24  ;;  %106 = vmatpush.bf16.msra.mxu1 %v328_v25  ;;  %v386_v25 = vld [vmem:[%s630_s2 + $0x8] sm:$0xff] (%p31_p0) }
  0x18   : > { %353 = vmatmul.msk.bf16.vlgmr.msra.gmra.mxu0 %vm82_vm0, %v41_v26  ;;  %354 = vmatmul.msk.bf16.vlgmr.msra.gmra.mxu1 %vm82_vm0, %v41_v26 }
  0x19   :  { %277 = vmatpush.bf16.msra.mxu1 (%p31_p0), %v386_v25 }
  0x95   : > { %v95_v27 = vpop.f32.mrf.mxu0  ;;  %v108_v28 = vpop.f32.mrf.mxu1 }
  0x96   : > { %v114_v30 = vrot.slane %v108_v28, 6 }
  0x98   : > { %v116_v31 = vsel %vm115_vm1, %v95_v27, %v114_v30  ;;  %v388_v30 = vld [vmem:[%s631_s3 + $0x8] sm:$0xff] (%p31_p0) }
  0x99   : > { %v118_v32 = vadd.f32 %v116_v31, %v40_v29  ;;  %v385_v29 = vld [vmem:[%s630_s2] sm:$0xff] (%p31_p0)  ;;  %249 = vmatpush.bf16.msra.mxu0 (%p31_p0), %v388_v30 }
  0x9a   :  { %278 = vmatpush.bf16.msra.mxu1 (%p31_p0), %v385_v29 }
  0x9b   : > { %v355_v33 = vmul.f32 -1.442695, %v118_v32  ;;  %v139_v39 = vrot.slane %v118_v32, 2 }
  0x9d   : > { %415 = vpow2.f32 %v355_v33  ;;  %v97_v34 = vpop.f32.mrf.mxu0  ;;  %v110_v35 = vpop.f32.mrf.mxu1  ;;  %250 = vmatpush.bf16.msra.mxu0 (%p31_p0), %v387_v0 }
  0xa3   : > { %v416_v36 = vpop.eup %415 }
  0xa4   : > { %v122_v37 = vadd.f32 1.0, %v416_v36 }
  0xa6   : > { %417 = vrcp.f32 %v122_v37  ;;  %v134_v42 = vand.u32 2147483648, %v122_v37  ;;  %v132_v44 = vand.u32 2147483647, %v122_v37  ;;  %vm128_vm3 = vweird.f32 %v122_v37 }
  0xa7   : > { %419 = vtanh.f32 %v139_v39 }
  0xa8   : > { %v135_v46 = vor.u32 1.1754944e-38, %v134_v42  ;;  %vm133_vm5 = vcmp.eq.f32.partialorder %v132_v44, 8.507059e+37 }
  0xac   : > { %v418_v38 = vpop.eup %417 }
  0xad   : > { %v124_v40 = vmul.f32 %v418_v38, %v122_v37  ;;  %vm129_vm2 = vweird.f32 %v418_v38  ;;  %v420_v48 = vpop.eup %419 }
  0xae   : > { %vm130_vm4 = vmor %vm128_vm3, %vm129_vm2 }
  0xaf   : > { %v125_v41 = vsub.f32 1.0, %v124_v40 }
  0xb1   : > { %v126_v43 = vmul.f32 %v418_v38, %v125_v41 }
  0xb3   : > { %v127_v45 = vadd.f32 %v418_v38, %v126_v43 }
  0xb5   : > { %v131_v47 = vsel %vm130_vm4, %v418_v38, %v127_v45 }
  0xb6   : > { %v136_v49 = vsel %vm133_vm5, %v135_v46, %v131_v47 }
  0xb7   : > { %v166_v50 = vmul.f32 %v420_v48, %v136_v49  ;;  %v165_v51 = vmul.f32 %v442_v16, %v136_v49 }
  0xb9   : > { %168 = vrot.lane.b32.xlu0 %v166_v50, %s452_s29 }
  0xc1   : > { %142 = vrot.lane.b32.xlu0 %v118_v32, %s452_s29 }
 0x12b   : > { %v169_v52 = vpop.permute.xlu0 %168 }
 0x12c   : > { %v171_v16 = vadd.f32 %v169_v52, %v165_v51  }
 0x12e   : > { %421 = vtanh.f32 %v171_v16 }
 0x133   : > { %v143_v54 = vpop.permute.xlu0 %142 }
 0x134   : > { %v422_v53 = vpop.eup %421  ;;  %v144_v55 = vrot.slane %v143_v54, 2 }
 0x135   : > { %174 = vrot.lane.b32.xlu1 %v422_v53, %s452_s29 }
 0x136   : > { %v356_v56 = vmul.f32 -1.442695, %v144_v55 }
 0x138   : > { %423 = vpow2.f32 %v356_v56 }
 0x13e   : > { %v424_v57 = vpop.eup %423 }
 0x13f   : > { %v149_v58 = vadd.f32 1.0, %v424_v57 }
 0x141   : > { %425 = vrcp.f32 %v149_v58  ;;  %v161_v17 = vand.u32 2147483648, %v149_v58  ;;  %vm155_vm7 = vweird.f32 %v149_v58  ;;  %v159_v18 = vand.u32 2147483647, %v149_v58 }
 0x143   : > { %v162_v20 = vor.u32 1.1754944e-38, %v161_v17  ;;  %vm160_vm9 = vcmp.eq.f32.partialorder %v159_v18, 8.507059e+37 }
 0x147   : > { %v426_v59 = vpop.eup %425 }
 0x148   : > { %v151_v60 = vmul.f32 %v426_v59, %v149_v58  ;;  %vm156_vm6 = vweird.f32 %v426_v59 }
 0x149   : > { %vm157_vm8 = vmor %vm155_vm7, %vm156_vm6 }
 0x14a   : > { %v152_v61 = vsub.f32 1.0, %v151_v60 }
 0x14c   : > { %v153_v62 = vmul.f32 %v426_v59, %v152_v61 }
 0x14e   : > { %v154_v63 = vadd.f32 %v426_v59, %v153_v62 }
 0x150   : > { %v158_v19 = vsel %vm157_vm8, %v426_v59, %v154_v63 }
 0x151   : > { %v163_v21 = vsel %vm160_vm9, %v162_v20, %v158_v19 }
 0x1a7   : > { %v175_v22 = vpop.permute.xlu1 %174 }
 0x1a8   : > { %v177_v17 = vmul.f32 %v175_v22, %v163_v21  }
 0x1aa   : > { %183 = vst [vmem:[#allocation1] ss:$4 sm:$0xff] %v177_v17 }
 0x1ab   : > { %180 = vst.msk [vmem:[%s178_s6] sm:$0x3] %vm179_vm10, %v177_v17 }
 0x1b1   : > { %v184_v23 = vld.sshfl [vmem:[#allocation1] sm:$0xff pattern:$0x73625140] }
 0x1b2   : > { %185 = vrot.lane.b32.xlu1 %v184_v23, %s453_s7  ;;  %v191_v26 = vld [vmem:[#allocation2] sm:$0x3] (%p31_p0)  ;;  %v192_v27 = vld [vmem:[#allocation2 + $0x2] sm:$0x3] (%p31_p0)  ;;  %v193_v28 = vld [vmem:[#allocation2 + $0x4] sm:$0x3] (%p31_p0) }
 0x1b3   :  { %200 = vst [vmem:[#allocation1] ss:$4 sm:$0xff] (%p31_p0), %v191_v26 }
 0x1b4   :  { %202 = vst [vmem:[#allocation1 + $0x1] ss:$4 sm:$0xff] (%p31_p0), %v192_v27 }
 0x1b5   :  { %204 = vst [vmem:[#allocation1 + $0x2] ss:$4 sm:$0xff] (%p31_p0), %v193_v28 }
 0x1bc   :  { %v205_v4 = vld.sshfl [vmem:[#allocation1] sm:$0xff pattern:$0x73625140] (%p31_p0) }
 0x1bd   :  { %v207_v5 = vpack.c.bf16 (%p31_p0), %v205_v4, %v205_v4 }
 0x1bf   :  { %375 = vmatmul.msk.bf16.vlgmr.msra.gmra.mxu1 (%p31_p0), %vm239_vm11, %v207_v5 }
 0x221   :  { %33 = sbr.rel (!%p31_p0) target bundleno = 7 (0x7), region = 54 }
 0x224   : > { %v186_v24 = vpop.permute.xlu1 %185 }
 0x225   : > { %190 = vst.msk [vmem:[%s189_s10] sm:$0x3] %vm179_vm10, %v186_v24 }
 0x22c   :  { %v194_v1 = vld [vmem:[#allocation3] sm:$0x3]  ;;  %v195_v2 = vld [vmem:[#allocation3 + $0x2] sm:$0x3]  ;;  %v196_v3 = vld [vmem:[#allocation3 + $0x4] sm:$0x3] }
 0x22d   :  { %215 = vst [vmem:[#allocation1] ss:$4 sm:$0xff] %v194_v1 }
 0x22e   :  { %217 = vst [vmem:[#allocation1 + $0x1] ss:$4 sm:$0xff] %v195_v2 }
 0x22f   :  { %219 = vst [vmem:[#allocation1 + $0x2] ss:$4 sm:$0xff] %v196_v3 }
 0x236   :  { %v220_v6 = vld.sshfl [vmem:[#allocation1] sm:$0xff pattern:$0x73625140] }
 0x237   :  { %v222_v7 = vpack.c.bf16 %v220_v6, %v220_v6 }
 0x239   :  { %366 = vmatmul.msk.bf16.vlgmr.msra.gmra.mxu0 %vm239_vm11, %v222_v7 }
 0x23c   :  { %v280_v8 = vpop.f32.mrf.mxu1 }
 0x244   :  { %v282_v9 = vpop.f32.mrf.mxu1 }
 0x2b6   :  { %v252_v11 = vpop.f32.mrf.mxu0 }
 0x2b7   :  { %v281_v12 = vadd.f32 %v280_v8, %v252_v11 }
 0x2b9   :  { %v288_v13 = vadd.f32 %v427_v10, %v281_v12 }
 0x2bb   :  { %v290_v14 = vrot.slane %v288_v13, 2  ;;  %v291_v15 = vrot.slane %v288_v13, 4  ;;  %295 = vst.msk [vmem:[%s633_s5] sm:$0x3] %vm294_vm12, %v288_v13 }
 0x2bd   :  { %296 = vst.msk [vmem:[%s633_s5 + $0x2] sm:$0x3] %vm294_vm12, %v290_v14 }
 0x2be   :  { %297 = vst.msk [vmem:[%s633_s5 + $0x4] sm:$0x3] %vm294_vm12, %v291_v15  ;;  %v254_v16 = vpop.f32.mrf.mxu0 }

// kernel: drum_forward.5
= control target key start
LH: loop header
LB: loop body
LE: loop exit
PB: predicated region body
PF: predicated region fallthrough
CT: control target
= control target key end

     0   :  { %s202_s16 = smov 0   ;;  %s221_s0 = inlined_call_operand.vmem [shape: f32[4,8], index: 0, kind: input, shape index: {}]   ;;  %s222_s1 = inlined_call_operand.vmem [shape: f32[3,4,5], index: 1, kind: input, shape index: {}]   ;;  %s223_s2 = inlined_call_operand.vmem [shape: bf16[8,32], index: 2, kind: input, shape index: {}]   ;;  %s224_s3 = inlined_call_operand.vmem [shape: f32[4,8], index: 3, kind: output, shape index: {}]  }
   0x1   :  { %v195_v0 = vld [vmem:[%s223_s2] sm:$0xf] }
   0x2   :  { %v16_v1 = vld [vmem:[%s221_s0] sm:$0xf]  }
   0x3 LB: > { %vm32_vm0 = vcmask 1043456   ;;  %v164_v3 = vmov 3   ;;  %v27_v4 = vpack.c.bf16 %v158_v1, %v158_v1  ;;  %vm28_vm1 = vcmask 64512   ;;  %s114_s0 = sshll.u32 %s162_s16, 2  ;;  %s169_s19 = smov 112   ;;  %s162_s16 = sphi %s202_s16, %s22_s16   ;;  %v158_v1 = vphi %v16_v1, %v225_v1  }
   0x4   : > { %v34_v2 = vsel %vm32_vm0, %v195_v0, 0  ;;  %142 = vset.pattern.permute.xlu1 %v164_v3  ;;  %v165_v5 = vmov 1   ;;  %s25_s18 = scalar_lea.vmem %s222_s1, %s114_s0  ;;  %v166_v6 = vmov 0   ;;  %v167_v8 = vmov 4   ;;  %s170_s20 = smov 120  }
   0x5   : > { %43 = vmatpush.bf16.msra.mxu0 %v34_v2  ;;  %140 = vset.pattern.permute.xlu0 %v165_v5  ;;  %v26_v7 = vld [vmem:[%s25_s18] sm:$0xf]  ;;  %v168_v9 = vmov 2   ;;  %s171_s21 = smov 104   ;;  %vm91_vm2 = vcmask 60416   ;;  %s22_s16 = sadd.s32 1, %s162_s16  }
   0x6   : > { %144 = vset.pattern.permute.xlu2 %v166_v6  ;;  %82 = vperm.xlu1 %142, %v26_v7   ;;  %p19_p0 = scmp.ge.s32.totalorder %s22_s16, 3  }
   0x7   : > { %62 = vperm.xlu0 %140, %v26_v7   ;;  %56 = vperm.xlu2 %144, %v26_v7  }
   0x8   : > { %115 = vmatmul.msk.bf16.vlgmr.msra.gmra.mxu0 %vm28_vm1, %v27_v4 }
   0xe   : > { %143 = vset.pattern.permute.xlu1 %v167_v8 }
   0xf   : > { %141 = vset.pattern.permute.xlu0 %v168_v9  ;;  %51 = vperm.xlu1 %143, %v26_v7  }
  0x10   : > { %72 = vperm.xlu0 %141, %v26_v7  }
  0x18   : > { %145 = vset.pattern.permute.xlu0 %v164_v3 }
  0x61   : > { %v57_v18 = vpop.permute.xlu2 %56 }
  0x78   : > { %v83_v15 = vpop.permute.xlu1 %82 }
  0x79   : > { %v63_v10 = vpop.permute.xlu0 %62 }
  0x81   : > { %v52_v19 = vpop.permute.xlu1 %51 }
  0x82   : > { %v73_v11 = vpop.permute.xlu0 %72  ;;  %v54_v21 = vmul.f32 %v158_v1, %v52_v19 }
  0x85   : > { %v45_v12 = vpop.f32.mrf.mxu0 }
  0x86   : > { %v75_v13 = vmul.f32 %v73_v11, %v45_v12  ;;  %v65_v14 = vmul.f32 %v63_v10, %v45_v12  ;;  %v85_v17 = vmul.f32 %v83_v15, %v45_v12  ;;  %v59_v22 = vmul.f32 %v57_v18, %v45_v12 }
  0x88   : > { %77 = vrot.lane.b32.xlu1 %v75_v13, %s169_s19  ;;  %67 = vrot.lane.b32.xlu2 %v65_v14, %s170_s20  ;;  %v60_v23 = vadd.f32 %v59_v22, %v54_v21 }
  0x8d   : > { %v47_v16 = vpop.f32.mrf.mxu0 }
  0x90   : > { %87 = vrot.lane.b32.xlu2 %v85_v17, %s171_s21 }
  0xe2   : > { %v68_v20 = vpop.permute.xlu2 %67 }
  0xe3   : > { %v70_v24 = vadd.f32 %v68_v20, %v60_v23 }
  0xea   : > { %v88_v27 = vpop.permute.xlu2 %87 }
  0xfa   : > { %v78_v25 = vpop.permute.xlu1 %77 }
  0xfb   : > { %v80_v26 = vadd.f32 %v78_v25, %v70_v24 }
  0xfd   : > { %v90_v28 = vadd.f32 %v88_v27, %v80_v26 }
  0xff   : > { %v92_v29 = vsel %vm91_vm2, %v90_v28, 0.0 }
 0x100   : > { %93 = vadd.xlane.f32.xlu0 %v92_v29 }
 0x173   : > { %v94_v30 = vpop.xlane.xlu0 %93 }
 0x174   : > { %v95_v31 = vmax.f32 %v94_v30, 1e-07 }
 0x176   : > { %146 = vrcp.f32 %v95_v31 }
 0x17b   :  { %21 = sbr.rel (!%p19_p0) target bundleno = 3 (0x3), region = 40 }
 0x17c   : > { %v147_v32 = vpop.eup %146 }
 0x17d   : > { %v97_v33 = vmul.f32 %v147_v32, %v90_v28  }
 0x17f   : > { %v225_v1 = vmov %v97_v33  ;;  %99 = vst.msk [vmem:[%s224_s3] sm:$0xf] (%p19_p0), %vm91_vm2, %v97_v33 }

</bundles_post_ra>
